<compile_context>
chip_gen: v6e
topology: v6e:2x2x1
jax: 0.10.0
libtpu: 0.0.40
codegen_flags: <defaults>
</compile_context>

<pallas_src>
import jax
import jax.numpy as jnp
import numpy as np
from jax.experimental import pallas as pl
from jax.experimental.pallas import tpu as pltpu


def lstm_forward_kernel(x_ref, h0_ref, c0_ref, wih_ref, whh_ref, b_ref,
                        wout_ref, bout_ref, out_ref):
    """LSTM recurrence over T steps + final Linear on h_T.

    x_ref:    (T*Bp, D)    time-major input, flattened over (T, Bp), Bp % 8 == 0
    h0_ref:   (Bp, H)
    c0_ref:   (Bp, H)
    wih_ref:  (D, 4H)      pre-transposed weight_ih_l0, gate order (i, f, o, g)
    whh_ref:  (H, 4H)      pre-transposed weight_hh_l0, gate order (i, f, o, g)
    b_ref:    (1, 4H)      b_ih + b_hh, gate order (i, f, o, g)
    wout_ref: (H, O_pad)   pre-transposed nn.Linear weight, zero-padded to 128 lanes
    bout_ref: (1, O_pad)
    out_ref:  (Bp, O_pad)
    """
    TB, _ = x_ref.shape
    Bp, H = h0_ref.shape
    T = TB // Bp

    whh = whh_ref[...]                                   # (H, 4H), vreg-resident

    # Hoisted input projection for ALL timesteps: one (T*Bp, D) x (D, 4H) MXU
    # pass with the combined bias folded in.  Kept as a value (vregs), no
    # scratch round trip.  Completely off the serial h-dependency chain.
    gx = (jnp.dot(x_ref[...], wih_ref[...],
                  preferred_element_type=jnp.float32)
          + b_ref[...])                                  # (T*Bp, 4H)

    h = h0_ref[...]
    c = c0_ref[...]

    # T is small and static: full Python unroll with static, 8-aligned slices.
    # Each step issues exactly one MXU dot (recurrent projection) plus
    # elementwise/EUP work.
    for t in range(T):
        gates = gx[t * Bp:(t + 1) * Bp, :] + jnp.dot(
            h, whh, preferred_element_type=jnp.float32)  # (Bp, 4H), i,f,o,g
        sig = jax.nn.sigmoid(gates[:, :3 * H])           # one sigmoid: i, f, o
        g_g = jnp.tanh(gates[:, 3 * H:])                 # one tanh:    g
        i_g = sig[:, 0 * H:1 * H]
        f_g = sig[:, 1 * H:2 * H]
        o_g = sig[:, 2 * H:3 * H]
        c = f_g * c + i_g * g_g
        h = o_g * jnp.tanh(c)

    # Final Linear: lanes pre-padded to 128 -> unmasked full-vreg store.
    out_ref[...] = (jnp.dot(h, wout_ref[...],
                            preferred_element_type=jnp.float32)
                    + bout_ref[...])


def rnn_model_forward(input_seq, hidden_state, params):
    """JAX wrapper reproducing RnnModel.forward (cell_type='LSTM', eval mode).

    input_seq:    (T, B, D) float32
    hidden_state: tuple (h0, c0), each (1, B, H)
    returns:      (score_seq (B, O), dummy_attn_weights (B, T))
    """
    T, B, D = input_seq.shape
    h0, c0 = hidden_state
    H = h0.shape[-1]
    O = params["b_out"].shape[-1]
    G4 = 4 * H

    Bp = ((B + 7) // 8) * 8          # sublane-pad batch -> aligned slab slices
    Op = ((O + 127) // 128) * 128    # lane-pad output  -> unmasked store

    # PyTorch gate order is (i, f, g, o); reorder columns to (i, f, o, g) so the
    # kernel applies one contiguous sigmoid block + one tanh block.
    perm = jnp.concatenate([
        jnp.arange(0, 2 * H),        # i, f
        jnp.arange(3 * H, 4 * H),    # o
        jnp.arange(2 * H, 3 * H),    # g
    ])
    wih_t = params["w_ih"].T[:, perm]                       # (D, 4H)
    whh_t = params["w_hh"].T[:, perm]                       # (H, 4H)
    b = (params["b_ih"] + params["b_hh"])[perm].reshape(1, G4)

    wout_pad = jnp.zeros((H, Op), jnp.float32).at[:, :O].set(params["w_out"].T)
    bout_pad = jnp.zeros((1, Op), jnp.float32).at[:, :O].set(params["b_out"])

    # Zero-pad the batch; padded rows are row-independent garbage, sliced away.
    x_pad = jnp.zeros((T, Bp, D), jnp.float32).at[:, :B, :].set(input_seq)
    h0_pad = jnp.zeros((Bp, H), jnp.float32).at[:B].set(h0[0])
    c0_pad = jnp.zeros((Bp, H), jnp.float32).at[:B].set(c0[0])
    x2d = x_pad.reshape(T * Bp, D)

    vmem = pl.BlockSpec(memory_space=pltpu.MemorySpace.VMEM)

    score_pad = pl.pallas_call(
        lstm_forward_kernel,
        out_shape=jax.ShapeDtypeStruct((Bp, Op), jnp.float32),
        in_specs=[vmem] * 8,
        out_specs=vmem,
    )(x2d, h0_pad, c0_pad, wih_t, whh_t, b, wout_pad, bout_pad)

    score_seq = score_pad[:B, :O]
    # TODO(synk): nn.Dropout is identity in inference mode; no kernel needed.
    dummy_attn_weights = jnp.zeros((B, T), dtype=jnp.float32)
    return score_seq, dummy_attn_weights


def _reference_forward(input_seq, hidden_state, params):
    """Pure-JAX reference matching PyTorch nn.LSTM + nn.Linear semantics."""
    h = hidden_state[0][0]
    c = hidden_state[1][0]
    H = h.shape[-1]
    for t in range(input_seq.shape[0]):
        gates = (input_seq[t] @ params["w_ih"].T + params["b_ih"]
                 + h @ params["w_hh"].T + params["b_hh"])
        i_g = jax.nn.sigmoid(gates[:, 0 * H:1 * H])
        f_g = jax.nn.sigmoid(gates[:, 1 * H:2 * H])
        g_g = jnp.tanh(gates[:, 2 * H:3 * H])
        o_g = jax.nn.sigmoid(gates[:, 3 * H:4 * H])
        c = f_g * c + i_g * g_g
        h = o_g * jnp.tanh(c)
    return h @ params["w_out"].T + params["b_out"]


def init_params(key, input_dim, hidden_size, output_dim):
    """Deterministic init matching PyTorch shapes (uniform +-1/sqrt(H))."""
    ks = jax.random.split(key, 6)
    s = 1.0 / np.sqrt(hidden_size)
    u = lambda k, shape: jax.random.uniform(k, shape, jnp.float32, -s, s)
    return {
        "w_ih": u(ks[0], (4 * hidden_size, input_dim)),
        "w_hh": u(ks[1], (4 * hidden_size, hidden_size)),
        "b_ih": u(ks[2], (4 * hidden_size,)),
        "b_hh": u(ks[3], (4 * hidden_size,)),
        "w_out": u(ks[4], (output_dim, hidden_size)),
        "b_out": u(ks[5], (output_dim,)),
    }


if __name__ == "__main__":
    T, B, D, H, O = 8, 2, 16, 32, 4  # seq, batch, input_dim, hidden, output_dim

    key = jax.random.PRNGKey(0)
    k_x, k_p = jax.random.split(key)
    params = init_params(k_p, D, H, O)

    input_seq = jax.random.normal(k_x, (T, B, D), dtype=jnp.float32)
    # init_hidden(batch_size) for LSTM: zeros (1, B, H) for both h and c.
    hidden_state = (jnp.zeros((1, B, H), jnp.float32),
                    jnp.zeros((1, B, H), jnp.float32))

    forward = jax.jit(rnn_model_forward)
    score_seq, attn = forward(input_seq, hidden_state, params)
    jax.block_until_ready((score_seq, attn))

    ref = _reference_forward(input_seq, hidden_state, params)
    np.testing.assert_allclose(np.asarray(score_seq), np.asarray(ref),
                               rtol=1e-3, atol=1e-3)
    assert attn.shape == (B, T) and float(jnp.abs(attn).sum()) == 0.0

    print("KERNEL_OK")
</pallas_src>

<mosaic_0001>
module attributes {stable_mosaic.version = 11 : i64} {
  func.func @lstm_forward_kernel(%arg0: memref<64x16xf32, #tpu.memory_space<vmem>>, %arg1: memref<8x32xf32, #tpu.memory_space<vmem>>, %arg2: memref<8x32xf32, #tpu.memory_space<vmem>>, %arg3: memref<16x128xf32, #tpu.memory_space<vmem>>, %arg4: memref<32x128xf32, #tpu.memory_space<vmem>>, %arg5: memref<1x128xf32, #tpu.memory_space<vmem>>, %arg6: memref<32x128xf32, #tpu.memory_space<vmem>>, %arg7: memref<1x128xf32, #tpu.memory_space<vmem>>, %arg8: memref<8x128xf32, #tpu.memory_space<vmem>>) attributes {dimension_semantics = [], scalar_prefetch = 0 : i64, scratch_operands = 0 : i64, tpu.core_type = #tpu.core_type<tc>} {
    %c0 = arith.constant 0 : index
    %c0_0 = arith.constant 0 : index
    %0 = vector.load %arg4[%c0, %c0_0] : memref<32x128xf32, #tpu.memory_space<vmem>>, vector<32x128xf32>
    %c0_1 = arith.constant 0 : index
    %c0_2 = arith.constant 0 : index
    %1 = vector.load %arg0[%c0_1, %c0_2] : memref<64x16xf32, #tpu.memory_space<vmem>>, vector<64x16xf32>
    %c0_3 = arith.constant 0 : index
    %c0_4 = arith.constant 0 : index
    %2 = vector.load %arg3[%c0_3, %c0_4] : memref<16x128xf32, #tpu.memory_space<vmem>>, vector<16x128xf32>
    %cst = arith.constant dense<0.000000e+00> : vector<64x128xf32>
    %3 = tpu.matmul %1, %2, %cst {dimension_numbers = #tpu.dot_dimension_numbers<[1], [0], [0], [1], [0, 0, 1, 1], [], []>} : vector<64x16xf32>, vector<16x128xf32>, vector<64x128xf32> -> vector<64x128xf32>
    %c0_5 = arith.constant 0 : index
    %c0_6 = arith.constant 0 : index
    %4 = vector.load %arg5[%c0_5, %c0_6] : memref<1x128xf32, #tpu.memory_space<vmem>>, vector<1x128xf32>
    %5 = vector.broadcast %4 : vector<1x128xf32> to vector<64x128xf32>
    %6 = arith.addf %3, %5 : vector<64x128xf32>
    %c0_7 = arith.constant 0 : index
    %c0_8 = arith.constant 0 : index
    %7 = vector.load %arg1[%c0_7, %c0_8] : memref<8x32xf32, #tpu.memory_space<vmem>>, vector<8x32xf32>
    %c0_9 = arith.constant 0 : index
    %c0_10 = arith.constant 0 : index
    %8 = vector.load %arg2[%c0_9, %c0_10] : memref<8x32xf32, #tpu.memory_space<vmem>>, vector<8x32xf32>
    %9 = vector.extract_strided_slice %6 {offsets = [0, 0], sizes = [8, 128], strides = [1, 1]} : vector<64x128xf32> to vector<8x128xf32>
    %cst_11 = arith.constant dense<0.000000e+00> : vector<8x128xf32>
    %10 = tpu.matmul %7, %0, %cst_11 {dimension_numbers = #tpu.dot_dimension_numbers<[1], [0], [0], [1], [0, 0, 1, 1], [], []>} : vector<8x32xf32>, vector<32x128xf32>, vector<8x128xf32> -> vector<8x128xf32>
    %11 = arith.addf %9, %10 : vector<8x128xf32>
    %12 = vector.extract_strided_slice %11 {offsets = [0, 0], sizes = [8, 96], strides = [1, 1]} : vector<8x128xf32> to vector<8x96xf32>
    %13 = arith.negf %12 : vector<8x96xf32>
    %14 = math.exp %13 : vector<8x96xf32>
    %cst_12 = arith.constant 1.000000e+00 : f32
    %15 = vector.broadcast %cst_12 : f32 to vector<8x96xf32>
    %16 = arith.addf %15, %14 : vector<8x96xf32>
    %17 = arith.divf %15, %16 : vector<8x96xf32>
    %18 = vector.extract_strided_slice %11 {offsets = [0, 96], sizes = [8, 32], strides = [1, 1]} : vector<8x128xf32> to vector<8x32xf32>
    %19 = math.tanh %18 : vector<8x32xf32>
    %20 = vector.extract_strided_slice %17 {offsets = [0, 0], sizes = [8, 32], strides = [1, 1]} : vector<8x96xf32> to vector<8x32xf32>
    %21 = vector.extract_strided_slice %17 {offsets = [0, 32], sizes = [8, 32], strides = [1, 1]} : vector<8x96xf32> to vector<8x32xf32>
    %22 = vector.extract_strided_slice %17 {offsets = [0, 64], sizes = [8, 32], strides = [1, 1]} : vector<8x96xf32> to vector<8x32xf32>
    %23 = arith.mulf %21, %8 : vector<8x32xf32>
    %24 = arith.mulf %20, %19 : vector<8x32xf32>
    %25 = arith.addf %23, %24 : vector<8x32xf32>
    %26 = math.tanh %25 : vector<8x32xf32>
    %27 = arith.mulf %22, %26 : vector<8x32xf32>
    %28 = vector.extract_strided_slice %6 {offsets = [8, 0], sizes = [8, 128], strides = [1, 1]} : vector<64x128xf32> to vector<8x128xf32>
    %cst_13 = arith.constant dense<0.000000e+00> : vector<8x128xf32>
    %29 = tpu.matmul %27, %0, %cst_13 {dimension_numbers = #tpu.dot_dimension_numbers<[1], [0], [0], [1], [0, 0, 1, 1], [], []>} : vector<8x32xf32>, vector<32x128xf32>, vector<8x128xf32> -> vector<8x128xf32>
    %30 = arith.addf %28, %29 : vector<8x128xf32>
    %31 = vector.extract_strided_slice %30 {offsets = [0, 0], sizes = [8, 96], strides = [1, 1]} : vector<8x128xf32> to vector<8x96xf32>
    %32 = arith.negf %31 : vector<8x96xf32>
    %33 = math.exp %32 : vector<8x96xf32>
    %cst_14 = arith.constant 1.000000e+00 : f32
    %34 = vector.broadcast %cst_14 : f32 to vector<8x96xf32>
    %35 = arith.addf %34, %33 : vector<8x96xf32>
    %36 = arith.divf %34, %35 : vector<8x96xf32>
    %37 = vector.extract_strided_slice %30 {offsets = [0, 96], sizes = [8, 32], strides = [1, 1]} : vector<8x128xf32> to vector<8x32xf32>
    %38 = math.tanh %37 : vector<8x32xf32>
    %39 = vector.extract_strided_slice %36 {offsets = [0, 0], sizes = [8, 32], strides = [1, 1]} : vector<8x96xf32> to vector<8x32xf32>
    %40 = vector.extract_strided_slice %36 {offsets = [0, 32], sizes = [8, 32], strides = [1, 1]} : vector<8x96xf32> to vector<8x32xf32>
    %41 = vector.extract_strided_slice %36 {offsets = [0, 64], sizes = [8, 32], strides = [1, 1]} : vector<8x96xf32> to vector<8x32xf32>
    %42 = arith.mulf %40, %25 : vector<8x32xf32>
    %43 = arith.mulf %39, %38 : vector<8x32xf32>
    %44 = arith.addf %42, %43 : vector<8x32xf32>
    %45 = math.tanh %44 : vector<8x32xf32>
    %46 = arith.mulf %41, %45 : vector<8x32xf32>
    %47 = vector.extract_strided_slice %6 {offsets = [16, 0], sizes = [8, 128], strides = [1, 1]} : vector<64x128xf32> to vector<8x128xf32>
    %cst_15 = arith.constant dense<0.000000e+00> : vector<8x128xf32>
    %48 = tpu.matmul %46, %0, %cst_15 {dimension_numbers = #tpu.dot_dimension_numbers<[1], [0], [0], [1], [0, 0, 1, 1], [], []>} : vector<8x32xf32>, vector<32x128xf32>, vector<8x128xf32> -> vector<8x128xf32>
    %49 = arith.addf %47, %48 : vector<8x128xf32>
    %50 = vector.extract_strided_slice %49 {offsets = [0, 0], sizes = [8, 96], strides = [1, 1]} : vector<8x128xf32> to vector<8x96xf32>
    %51 = arith.negf %50 : vector<8x96xf32>
    %52 = math.exp %51 : vector<8x96xf32>
    %cst_16 = arith.constant 1.000000e+00 : f32
    %53 = vector.broadcast %cst_16 : f32 to vector<8x96xf32>
    %54 = arith.addf %53, %52 : vector<8x96xf32>
    %55 = arith.divf %53, %54 : vector<8x96xf32>
    %56 = vector.extract_strided_slice %49 {offsets = [0, 96], sizes = [8, 32], strides = [1, 1]} : vector<8x128xf32> to vector<8x32xf32>
    %57 = math.tanh %56 : vector<8x32xf32>
    %58 = vector.extract_strided_slice %55 {offsets = [0, 0], sizes = [8, 32], strides = [1, 1]} : vector<8x96xf32> to vector<8x32xf32>
    %59 = vector.extract_strided_slice %55 {offsets = [0, 32], sizes = [8, 32], strides = [1, 1]} : vector<8x96xf32> to vector<8x32xf32>
    %60 = vector.extract_strided_slice %55 {offsets = [0, 64], sizes = [8, 32], strides = [1, 1]} : vector<8x96xf32> to vector<8x32xf32>
    %61 = arith.mulf %59, %44 : vector<8x32xf32>
    %62 = arith.mulf %58, %57 : vector<8x32xf32>
    %63 = arith.addf %61, %62 : vector<8x32xf32>
    %64 = math.tanh %63 : vector<8x32xf32>
    %65 = arith.mulf %60, %64 : vector<8x32xf32>
    %66 = vector.extract_strided_slice %6 {offsets = [24, 0], sizes = [8, 128], strides = [1, 1]} : vector<64x128xf32> to vector<8x128xf32>
    %cst_17 = arith.constant dense<0.000000e+00> : vector<8x128xf32>
    %67 = tpu.matmul %65, %0, %cst_17 {dimension_numbers = #tpu.dot_dimension_numbers<[1], [0], [0], [1], [0, 0, 1, 1], [], []>} : vector<8x32xf32>, vector<32x128xf32>, vector<8x128xf32> -> vector<8x128xf32>
    %68 = arith.addf %66, %67 : vector<8x128xf32>
    %69 = vector.extract_strided_slice %68 {offsets = [0, 0], sizes = [8, 96], strides = [1, 1]} : vector<8x128xf32> to vector<8x96xf32>
    %70 = arith.negf %69 : vector<8x96xf32>
    %71 = math.exp %70 : vector<8x96xf32>
    %cst_18 = arith.constant 1.000000e+00 : f32
    %72 = vector.broadcast %cst_18 : f32 to vector<8x96xf32>
    %73 = arith.addf %72, %71 : vector<8x96xf32>
    %74 = arith.divf %72, %73 : vector<8x96xf32>
    %75 = vector.extract_strided_slice %68 {offsets = [0, 96], sizes = [8, 32], strides = [1, 1]} : vector<8x128xf32> to vector<8x32xf32>
    %76 = math.tanh %75 : vector<8x32xf32>
    %77 = vector.extract_strided_slice %74 {offsets = [0, 0], sizes = [8, 32], strides = [1, 1]} : vector<8x96xf32> to vector<8x32xf32>
    %78 = vector.extract_strided_slice %74 {offsets = [0, 32], sizes = [8, 32], strides = [1, 1]} : vector<8x96xf32> to vector<8x32xf32>
    %79 = vector.extract_strided_slice %74 {offsets = [0, 64], sizes = [8, 32], strides = [1, 1]} : vector<8x96xf32> to vector<8x32xf32>
    %80 = arith.mulf %78, %63 : vector<8x32xf32>
    %81 = arith.mulf %77, %76 : vector<8x32xf32>
    %82 = arith.addf %80, %81 : vector<8x32xf32>
    %83 = math.tanh %82 : vector<8x32xf32>
    %84 = arith.mulf %79, %83 : vector<8x32xf32>
    %85 = vector.extract_strided_slice %6 {offsets = [32, 0], sizes = [8, 128], strides = [1, 1]} : vector<64x128xf32> to vector<8x128xf32>
    %cst_19 = arith.constant dense<0.000000e+00> : vector<8x128xf32>
    %86 = tpu.matmul %84, %0, %cst_19 {dimension_numbers = #tpu.dot_dimension_numbers<[1], [0], [0], [1], [0, 0, 1, 1], [], []>} : vector<8x32xf32>, vector<32x128xf32>, vector<8x128xf32> -> vector<8x128xf32>
    %87 = arith.addf %85, %86 : vector<8x128xf32>
    %88 = vector.extract_strided_slice %87 {offsets = [0, 0], sizes = [8, 96], strides = [1, 1]} : vector<8x128xf32> to vector<8x96xf32>
    %89 = arith.negf %88 : vector<8x96xf32>
    %90 = math.exp %89 : vector<8x96xf32>
    %cst_20 = arith.constant 1.000000e+00 : f32
    %91 = vector.broadcast %cst_20 : f32 to vector<8x96xf32>
    %92 = arith.addf %91, %90 : vector<8x96xf32>
    %93 = arith.divf %91, %92 : vector<8x96xf32>
    %94 = vector.extract_strided_slice %87 {offsets = [0, 96], sizes = [8, 32], strides = [1, 1]} : vector<8x128xf32> to vector<8x32xf32>
    %95 = math.tanh %94 : vector<8x32xf32>
    %96 = vector.extract_strided_slice %93 {offsets = [0, 0], sizes = [8, 32], strides = [1, 1]} : vector<8x96xf32> to vector<8x32xf32>
    %97 = vector.extract_strided_slice %93 {offsets = [0, 32], sizes = [8, 32], strides = [1, 1]} : vector<8x96xf32> to vector<8x32xf32>
    %98 = vector.extract_strided_slice %93 {offsets = [0, 64], sizes = [8, 32], strides = [1, 1]} : vector<8x96xf32> to vector<8x32xf32>
    %99 = arith.mulf %97, %82 : vector<8x32xf32>
    %100 = arith.mulf %96, %95 : vector<8x32xf32>
    %101 = arith.addf %99, %100 : vector<8x32xf32>
    %102 = math.tanh %101 : vector<8x32xf32>
    %103 = arith.mulf %98, %102 : vector<8x32xf32>
    %104 = vector.extract_strided_slice %6 {offsets = [40, 0], sizes = [8, 128], strides = [1, 1]} : vector<64x128xf32> to vector<8x128xf32>
    %cst_21 = arith.constant dense<0.000000e+00> : vector<8x128xf32>
    %105 = tpu.matmul %103, %0, %cst_21 {dimension_numbers = #tpu.dot_dimension_numbers<[1], [0], [0], [1], [0, 0, 1, 1], [], []>} : vector<8x32xf32>, vector<32x128xf32>, vector<8x128xf32> -> vector<8x128xf32>
    %106 = arith.addf %104, %105 : vector<8x128xf32>
    %107 = vector.extract_strided_slice %106 {offsets = [0, 0], sizes = [8, 96], strides = [1, 1]} : vector<8x128xf32> to vector<8x96xf32>
    %108 = arith.negf %107 : vector<8x96xf32>
    %109 = math.exp %108 : vector<8x96xf32>
    %cst_22 = arith.constant 1.000000e+00 : f32
    %110 = vector.broadcast %cst_22 : f32 to vector<8x96xf32>
    %111 = arith.addf %110, %109 : vector<8x96xf32>
    %112 = arith.divf %110, %111 : vector<8x96xf32>
    %113 = vector.extract_strided_slice %106 {offsets = [0, 96], sizes = [8, 32], strides = [1, 1]} : vector<8x128xf32> to vector<8x32xf32>
    %114 = math.tanh %113 : vector<8x32xf32>
    %115 = vector.extract_strided_slice %112 {offsets = [0, 0], sizes = [8, 32], strides = [1, 1]} : vector<8x96xf32> to vector<8x32xf32>
    %116 = vector.extract_strided_slice %112 {offsets = [0, 32], sizes = [8, 32], strides = [1, 1]} : vector<8x96xf32> to vector<8x32xf32>
    %117 = vector.extract_strided_slice %112 {offsets = [0, 64], sizes = [8, 32], strides = [1, 1]} : vector<8x96xf32> to vector<8x32xf32>
    %118 = arith.mulf %116, %101 : vector<8x32xf32>
    %119 = arith.mulf %115, %114 : vector<8x32xf32>
    %120 = arith.addf %118, %119 : vector<8x32xf32>
    %121 = math.tanh %120 : vector<8x32xf32>
    %122 = arith.mulf %117, %121 : vector<8x32xf32>
    %123 = vector.extract_strided_slice %6 {offsets = [48, 0], sizes = [8, 128], strides = [1, 1]} : vector<64x128xf32> to vector<8x128xf32>
    %cst_23 = arith.constant dense<0.000000e+00> : vector<8x128xf32>
    %124 = tpu.matmul %122, %0, %cst_23 {dimension_numbers = #tpu.dot_dimension_numbers<[1], [0], [0], [1], [0, 0, 1, 1], [], []>} : vector<8x32xf32>, vector<32x128xf32>, vector<8x128xf32> -> vector<8x128xf32>
    %125 = arith.addf %123, %124 : vector<8x128xf32>
    %126 = vector.extract_strided_slice %125 {offsets = [0, 0], sizes = [8, 96], strides = [1, 1]} : vector<8x128xf32> to vector<8x96xf32>
    %127 = arith.negf %126 : vector<8x96xf32>
    %128 = math.exp %127 : vector<8x96xf32>
    %cst_24 = arith.constant 1.000000e+00 : f32
    %129 = vector.broadcast %cst_24 : f32 to vector<8x96xf32>
    %130 = arith.addf %129, %128 : vector<8x96xf32>
    %131 = arith.divf %129, %130 : vector<8x96xf32>
    %132 = vector.extract_strided_slice %125 {offsets = [0, 96], sizes = [8, 32], strides = [1, 1]} : vector<8x128xf32> to vector<8x32xf32>
    %133 = math.tanh %132 : vector<8x32xf32>
    %134 = vector.extract_strided_slice %131 {offsets = [0, 0], sizes = [8, 32], strides = [1, 1]} : vector<8x96xf32> to vector<8x32xf32>
    %135 = vector.extract_strided_slice %131 {offsets = [0, 32], sizes = [8, 32], strides = [1, 1]} : vector<8x96xf32> to vector<8x32xf32>
    %136 = vector.extract_strided_slice %131 {offsets = [0, 64], sizes = [8, 32], strides = [1, 1]} : vector<8x96xf32> to vector<8x32xf32>
    %137 = arith.mulf %135, %120 : vector<8x32xf32>
    %138 = arith.mulf %134, %133 : vector<8x32xf32>
    %139 = arith.addf %137, %138 : vector<8x32xf32>
    %140 = math.tanh %139 : vector<8x32xf32>
    %141 = arith.mulf %136, %140 : vector<8x32xf32>
    %142 = vector.extract_strided_slice %6 {offsets = [56, 0], sizes = [8, 128], strides = [1, 1]} : vector<64x128xf32> to vector<8x128xf32>
    %cst_25 = arith.constant dense<0.000000e+00> : vector<8x128xf32>
    %143 = tpu.matmul %141, %0, %cst_25 {dimension_numbers = #tpu.dot_dimension_numbers<[1], [0], [0], [1], [0, 0, 1, 1], [], []>} : vector<8x32xf32>, vector<32x128xf32>, vector<8x128xf32> -> vector<8x128xf32>
    %144 = arith.addf %142, %143 : vector<8x128xf32>
    %145 = vector.extract_strided_slice %144 {offsets = [0, 0], sizes = [8, 96], strides = [1, 1]} : vector<8x128xf32> to vector<8x96xf32>
    %146 = arith.negf %145 : vector<8x96xf32>
    %147 = math.exp %146 : vector<8x96xf32>
    %cst_26 = arith.constant 1.000000e+00 : f32
    %148 = vector.broadcast %cst_26 : f32 to vector<8x96xf32>
    %149 = arith.addf %148, %147 : vector<8x96xf32>
    %150 = arith.divf %148, %149 : vector<8x96xf32>
    %151 = vector.extract_strided_slice %144 {offsets = [0, 96], sizes = [8, 32], strides = [1, 1]} : vector<8x128xf32> to vector<8x32xf32>
    %152 = math.tanh %151 : vector<8x32xf32>
    %153 = vector.extract_strided_slice %150 {offsets = [0, 0], sizes = [8, 32], strides = [1, 1]} : vector<8x96xf32> to vector<8x32xf32>
    %154 = vector.extract_strided_slice %150 {offsets = [0, 32], sizes = [8, 32], strides = [1, 1]} : vector<8x96xf32> to vector<8x32xf32>
    %155 = vector.extract_strided_slice %150 {offsets = [0, 64], sizes = [8, 32], strides = [1, 1]} : vector<8x96xf32> to vector<8x32xf32>
    %156 = arith.mulf %154, %139 : vector<8x32xf32>
    %157 = arith.mulf %153, %152 : vector<8x32xf32>
    %158 = arith.addf %156, %157 : vector<8x32xf32>
    %159 = math.tanh %158 : vector<8x32xf32>
    %160 = arith.mulf %155, %159 : vector<8x32xf32>
    %c0_27 = arith.constant 0 : index
    %c0_28 = arith.constant 0 : index
    %161 = vector.load %arg6[%c0_27, %c0_28] : memref<32x128xf32, #tpu.memory_space<vmem>>, vector<32x128xf32>
    %cst_29 = arith.constant dense<0.000000e+00> : vector<8x128xf32>
    %162 = tpu.matmul %160, %161, %cst_29 {dimension_numbers = #tpu.dot_dimension_numbers<[1], [0], [0], [1], [0, 0, 1, 1], [], []>} : vector<8x32xf32>, vector<32x128xf32>, vector<8x128xf32> -> vector<8x128xf32>
    %c0_30 = arith.constant 0 : index
    %c0_31 = arith.constant 0 : index
    %163 = vector.load %arg7[%c0_30, %c0_31] : memref<1x128xf32, #tpu.memory_space<vmem>>, vector<1x128xf32>
    %164 = vector.broadcast %163 : vector<1x128xf32> to vector<8x128xf32>
    %165 = arith.addf %162, %164 : vector<8x128xf32>
    %c0_32 = arith.constant 0 : index
    %c0_33 = arith.constant 0 : index
    %166 = vector.load %arg8[%c0_32, %c0_33] : memref<8x128xf32, #tpu.memory_space<vmem>>, vector<8x128xf32>
    tpu.vector_store %arg8[%c0_32, %c0_33], %165 {strides = array<i32>} : memref<8x128xf32, #tpu.memory_space<vmem>>, vector<8x128xf32>,
    return
  }
}

</mosaic_0001>

<bundles_post_ra>
// kernel: rnn_model_forward.1
= control target key start
LH: loop header
LB: loop body
LE: loop exit
PB: predicated region body
PF: predicated region fallthrough
CT: control target
= control target key end

     0   :  { %v1341_v0 = vmov 0.0   ;;  %vm1342_vm0 = vmmov 0   ;;  %vm50_vm1 = vcmask 130048   ;;  %vm182_vm2 = vcmask 261120   ;;  %s1343_s22 = smov 32   ;;  %s1625_s3 = inlined_call_operand.vmem [shape: f32[16,128], index: 3, kind: input, shape index: {}]   ;;  %s1626_s4 = inlined_call_operand.vmem [shape: f32[32,128], index: 4, kind: input, shape index: {}]   ;;  %s1627_s0 = inlined_call_operand.vmem [shape: f32[64,16], index: 0, kind: input, shape index: {}]   ;;  %s1628_s1 = inlined_call_operand.vmem [shape: f32[8,32], index: 1, kind: input, shape index: {}]   ;;  %s1629_s5 = inlined_call_operand.vmem [shape: f32[1,128], index: 5, kind: input, shape index: {}]   ;;  %s1630_s2 = inlined_call_operand.vmem [shape: f32[8,32], index: 2, kind: input, shape index: {}]   ;;  %s1631_s6 = inlined_call_operand.vmem [shape: f32[32,128], index: 6, kind: input, shape index: {}]   ;;  %s1632_s7 = inlined_call_operand.vmem [shape: f32[1,128], index: 7, kind: input, shape index: {}]   ;;  %s1633_s8 = inlined_call_operand.vmem [shape: f32[8,128], index: 8, kind: output, shape index: {}]  }
   0x1   :  { %1174 = vmatprep.subr.mxu1 %v1341_v0  ;;  %v42_v1 = vld [vmem:[%s1625_s3 + $0x8] sm:$0xff]  ;;  %v1397_v2 = vld [vmem:[%s1626_s4 + $0x18] sm:$0xff]  ;;  %v41_v3 = vld [vmem:[%s1625_s3] sm:$0xff]  ;;  %1182 = vmatprep.mubr.msk.f32.mxu1 %vm1342_vm0, %v1341_v0 }
   0x2   :  { %1158 = vmatprep.subr.mxu0 %v42_v1  ;;  %1175 = vmatpush3.msra.mxu1 %v1397_v2  ;;  %v1408_v4 = vld [vmem:[%s1626_s4 + $0x10] sm:$0xff]  ;;  %v33_v5 = vld [vmem:[%s1627_s0] sm:$0xff]  ;;  %v34_v6 = vld [vmem:[%s1627_s0 + $0x8] sm:$0xff] }
   0x3   :  { %1159 = vmatpush3.msra.mxu0 %v42_v1  ;;  %1176 = vmatprep.subr.mxu1 %v1341_v0  ;;  %v1421_v7 = vld [vmem:[%s1626_s4 + $0x8] sm:$0xff]  ;;  %v1429_v8 = vld [vmem:[%s1626_s4] sm:$0xff]  ;;  %v35_v47 = vld [vmem:[%s1627_s0 + $0x10] sm:$0xff] }
   0x4   :  { %1160 = vmatprep.subr.mxu0 %v41_v3  ;;  %1177 = vmatpush3.msra.mxu1 %v1408_v4  ;;  %v180_v9 = vld [vmem:[%s1628_s1] sm:$0xff]  ;;  %v36_v48 = vld [vmem:[%s1627_s0 + $0x18] sm:$0xff]  ;;  %v38_v50 = vld [vmem:[%s1627_s0 + $0x28] sm:$0xff] }
   0x5   :  { %1161 = vmatpush3.msra.mxu0 %v41_v3  ;;  %1162 = vmatprep.mubr.msk.f32.mxu0 %vm50_vm1, %v33_v5  ;;  %v1461_v11 = vld [vmem:[%s1629_s5] ss:$0 sm:$0xff]  ;;  %v39_v51 = vld [vmem:[%s1627_s0 + $0x30] sm:$0xff]  ;;  %v40_v52 = vld [vmem:[%s1627_s0 + $0x38] sm:$0xff] }
   0x6   :  { %1178 = vmatprep.subr.mxu1 %v1341_v0  ;;  %1163 = vmatmul.mubr.msk.f32.vlgmr.msra.gmra.mxu0 %vm50_vm1, %v34_v6  ;;  %v181_v18 = vld [vmem:[%s1630_s2] sm:$0xff]  ;;  %s1344_s2 = smov 64  }
   0x7   :  { %1179 = vmatpush3.msra.mxu1 %v1421_v7  ;;  %1196 = vmatprep.subr.mxu0 %v1341_v0  ;;  %v37_v49 = vld [vmem:[%s1627_s0 + $0x20] sm:$0xff] }
   0x8   :  { %1180 = vmatprep.subr.mxu1 %v1341_v0  ;;  %1197 = vmatpush3.msra.mxu0 %v1397_v2 }
   0x9   :  { %1181 = vmatpush3.msra.mxu1 %v1429_v8  ;;  %1198 = vmatprep.subr.mxu0 %v1341_v0 }
   0xa   :  { %1183 = vmatmul.mubr.msk.f32.vlgmr.msra.gmra.mxu1 %vm182_vm2, %v180_v9  ;;  %1185 = vmatprep.subr.mxu1 %v1341_v0 }
   0xb   :  { %1186 = vmatpush3.msra.mxu1 %v1397_v2  ;;  %1193 = vmatprep.mubr.msk.f32.mxu1 %vm1342_vm0, %v1341_v0 }
   0xc   :  { %1187 = vmatprep.subr.mxu1 %v1341_v0  ;;  %1199 = vmatpush3.msra.mxu0 %v1408_v4 }
   0xd   :  { %1188 = vmatpush3.msra.mxu1 %v1408_v4  ;;  %1200 = vmatprep.subr.mxu0 %v1341_v0 }
   0xe   :  { %1189 = vmatprep.subr.mxu1 %v1341_v0  ;;  %1201 = vmatpush3.msra.mxu0 %v1421_v7 }
   0xf   :  { %1190 = vmatpush3.msra.mxu1 %v1421_v7  ;;  %1202 = vmatprep.subr.mxu0 %v1341_v0 }
  0x10   :  { %1191 = vmatprep.subr.mxu1 %v1341_v0  ;;  %1203 = vmatpush3.msra.mxu0 %v1429_v8 }
  0x11   :  { %1192 = vmatpush3.msra.mxu1 %v1429_v8  ;;  %1218 = vmatprep.subr.mxu0 %v1341_v0 }
  0x12   :  { %1207 = vmatprep.subr.mxu1 %v1341_v0  ;;  %1165 = vmatprep.mubr.msk.f32.mxu0 %vm50_vm1, %v35_v47 }
  0x13   :  { %1166 = vmatmul.mubr.msk.f32.gmra.mxu0 %vm50_vm1, %v36_v48 }
  0x14   :  { %1168 = vmatprep.mubr.msk.f32.mxu0 %vm50_vm1, %v37_v49 }
  0x17   :  { %1169 = vmatmul.mubr.msk.f32.gmra.mxu0 %vm50_vm1, %v38_v50 }
  0x18   :  { %1171 = vmatprep.mubr.msk.f32.mxu0 %vm50_vm1, %v39_v51 }
  0x1b   :  { %1172 = vmatmul.mubr.msk.f32.gmra.mxu0 %vm50_vm1, %v40_v52 }
  0x1c   :  { %1204 = vmatprep.mubr.msk.f32.mxu0 %vm1342_vm0, %v1341_v0 }
  0xc6   :  { %v1164_v10 = vpop.f32.mrf.mxu0 }
  0xc7   :  { %v147_v33 = vadd.f32 %v1164_v10, %v1461_v11 }
  0xc8   :  { %v141_v12 = vpop.f32.mrf.mxu0 }
  0xc9   :  { %v142_v13 = vadd.f32 %v1461_v11, %v141_v12 }
  0xca   :  { %v252_v14 = vpop.f32.mrf.mxu1 }
  0xcb   :  { %v256_v15 = vadd.f32 %v252_v14, %v142_v13 }
  0xcc   :  { %v1184_v16 = vpop.f32.mrf.mxu1 }
  0xcd   :  { %1277 = vtanh.f32 %v256_v15  ;;  %v1086_v19 = vmul.f32 -1.442695, %v256_v15 }
  0xcf   :  { %1279 = vpow2.f32 %v1086_v19 }
  0xd3   :  { %v1167_v57 = vpop.f32.mrf.mxu0 }
  0xd5   :  { %v151_v58 = vpop.f32.mrf.mxu0 }
  0xd6   :  { %v152_v63 = vadd.f32 %v1461_v11, %v151_v58 }
  0xd7   :  { %v1525_v59 = vpop.f32.mrf.mxu0 }
  0xd9   :  { %v1527_v60 = vpop.f32.mrf.mxu0 }
  0xda   :  { %v1278_v17 = vpop.eup %1277 }
  0xdb   :  { %270 = vrot.lane.b32.xlu0 %v1278_v17, %s1343_s22  ;;  %v1529_v61 = vpop.f32.mrf.mxu0 }
  0xdc   :  { %v1280_v20 = vpop.eup %1279 }
  0xdd   :  { %v260_v21 = vadd.f32 1.0, %v1280_v20  ;;  %v1531_v62 = vpop.f32.mrf.mxu0 }
  0xdf   :  { %265 = vrot.lane.b32.xlu0 %v181_v18, %s1343_s22  ;;  %1281 = vrcp.f32 %v260_v21 }
  0xec   :  { %v1282_v22 = vpop.eup %1281 }
 0x14d   :  { %v271_v23 = vpop.permute.xlu0 %270 }
 0x14e   :  { %v273_v24 = vmul.f32 %v1282_v22, %v271_v23  ;;  %v157_v23 = vadd.f32 %v1167_v57, %v1461_v11 }
 0x150   :  { %275 = vrot.lane.b32.xlu1 %v273_v24, %s1343_s22 }
 0x151   :  { %v266_v25 = vpop.permute.xlu0 %265 }
 0x152   :  { %v268_v26 = vmul.f32 %v1282_v22, %v266_v25 }
 0x1c2   :  { %v276_v27 = vpop.permute.xlu1 %275 }
 0x1c3   :  { %v278_v28 = vadd.f32 %v276_v27, %v268_v26 }
 0x1c5   :  { %1283 = vtanh.f32 %v278_v28 }
 0x1d2   :  { %v1284_v29 = vpop.eup %1283 }
 0x1d3   :  { %281 = vrot.lane.b32.xlu1 %v1284_v29, %s1343_s22 }
 0x245   :  { %v282_v30 = vpop.permute.xlu1 %281 }
 0x246   :  { %v284_v31 = vmul.f32 %v1282_v22, %v282_v30 }
 0x248   :  { %286 = vrot.lane.b32.xlu0 %v284_v31, %s1344_s2 }
 0x2ba   :  { %v287_v32 = vpop.permute.xlu0 %286 }
 0x2bb   :  { %1194 = vmatmul.mubr.msk.f32.vlgmr.msra.gmra.mxu1 %vm182_vm2, %v287_v32 }
 0x2bc   :  { %1208 = vmatpush3.msra.mxu1 %v1397_v2  ;;  %1215 = vmatprep.mubr.msk.f32.mxu1 %vm1342_vm0, %v1341_v0 }
 0x2bd   :  { %1209 = vmatprep.subr.mxu1 %v1341_v0 }
 0x2be   :  { %1210 = vmatpush3.msra.mxu1 %v1408_v4 }
 0x2bf   :  { %1211 = vmatprep.subr.mxu1 %v1341_v0 }
 0x2c0   :  { %1212 = vmatpush3.msra.mxu1 %v1421_v7 }
 0x2c1   :  { %1213 = vmatprep.subr.mxu1 %v1341_v0 }
 0x2c2   :  { %1214 = vmatpush3.msra.mxu1 %v1429_v8 }
 0x2c3   :  { %1229 = vmatprep.subr.mxu1 %v1341_v0 }
 0x37b   :  { %v356_v34 = vpop.f32.mrf.mxu1 }
 0x37c   :  { %v360_v35 = vadd.f32 %v356_v34, %v147_v33 }
 0x37d   :  { %v1195_v36 = vpop.f32.mrf.mxu1 }
 0x37e   :  { %1285 = vtanh.f32 %v360_v35  ;;  %v1088_v38 = vmul.f32 -1.442695, %v360_v35 }
 0x380   :  { %1287 = vpow2.f32 %v1088_v38 }
 0x38b   :  { %v1286_v37 = vpop.eup %1285 }
 0x38c   :  { %370 = vrot.lane.b32.xlu1 %v1286_v37, %s1343_s22 }
 0x38d   :  { %v1288_v39 = vpop.eup %1287 }
 0x38e   :  { %v364_v40 = vadd.f32 1.0, %v1288_v39 }
 0x390   :  { %1289 = vrcp.f32 %v364_v40 }
 0x39d   :  { %v1290_v41 = vpop.eup %1289 }
 0x39e   :  { %v368_v44 = vmul.f32 %v1290_v41, %v278_v28 }
 0x3fe   :  { %v371_v42 = vpop.permute.xlu1 %370 }
 0x3ff   :  { %v373_v43 = vmul.f32 %v1290_v41, %v371_v42 }
 0x401   :  { %375 = vrot.lane.b32.xlu0 %v373_v43, %s1343_s22 }
 0x473   :  { %v376_v45 = vpop.permute.xlu0 %375 }
 0x474   :  { %v378_v46 = vadd.f32 %v376_v45, %v368_v44 }
 0x476   :  { %1291 = vtanh.f32 %v378_v46 }
 0x483   :  { %v1292_v53 = vpop.eup %1291 }
 0x484   :  { %381 = vrot.lane.b32.xlu1 %v1292_v53, %s1343_s22 }
 0x4f6   :  { %v382_v54 = vpop.permute.xlu1 %381 }
 0x4f7   :  { %v384_v55 = vmul.f32 %v1290_v41, %v382_v54  ;;  %v162_v41 = vadd.f32 %v1461_v11, %v1527_v60  ;;  %v167_v60 = vadd.f32 %v1525_v59, %v1461_v11 }
 0x4f9   :  { %386 = vrot.lane.b32.xlu0 %v384_v55, %s1344_s2 }
 0x56b   :  { %v387_v56 = vpop.permute.xlu0 %386 }
 0x56c   :  { %1205 = vmatmul.mubr.msk.f32.vlgmr.msra.gmra.mxu0 %vm182_vm2, %v387_v56 }
 0x56d   :  { %1219 = vmatpush3.msra.mxu0 %v1397_v2  ;;  %1226 = vmatprep.mubr.msk.f32.mxu0 %vm1342_vm0, %v1341_v0 }
 0x56e   :  { %1220 = vmatprep.subr.mxu0 %v1341_v0 }
 0x56f   :  { %1221 = vmatpush3.msra.mxu0 %v1408_v4 }
 0x570   :  { %1222 = vmatprep.subr.mxu0 %v1341_v0 }
 0x571   :  { %1223 = vmatpush3.msra.mxu0 %v1421_v7 }
 0x572   :  { %1224 = vmatprep.subr.mxu0 %v1341_v0 }
 0x573   :  { %1225 = vmatpush3.msra.mxu0 %v1429_v8 }
 0x574   :  { %1240 = vmatprep.subr.mxu0 %v1341_v0 }
 0x62c   :  { %v456_v1 = vpop.f32.mrf.mxu0 }
 0x62d   :  { %v460_v3 = vadd.f32 %v456_v1, %v152_v63 }
 0x62e   :  { %v1206_v5 = vpop.f32.mrf.mxu0 }
 0x62f   :  { %1293 = vtanh.f32 %v460_v3  ;;  %v1090_v9 = vmul.f32 -1.442695, %v460_v3 }
 0x631   :  { %1295 = vpow2.f32 %v1090_v9 }
 0x63c   :  { %v1294_v6 = vpop.eup %1293 }
 0x63d   :  { %470 = vrot.lane.b32.xlu1 %v1294_v6, %s1343_s22 }
 0x63e   :  { %v1296_v10 = vpop.eup %1295 }
 0x63f   :  { %v464_v12 = vadd.f32 1.0, %v1296_v10 }
 0x641   :  { %1297 = vrcp.f32 %v464_v12 }
 0x64e   :  { %v1298_v13 = vpop.eup %1297 }
 0x64f   :  { %v468_v16 = vmul.f32 %v1298_v13, %v378_v46 }
 0x6af   :  { %v471_v14 = vpop.permute.xlu1 %470 }
 0x6b0   :  { %v473_v15 = vmul.f32 %v1298_v13, %v471_v14 }
 0x6b2   :  { %475 = vrot.lane.b32.xlu0 %v473_v15, %s1343_s22 }
 0x724   :  { %v476_v17 = vpop.permute.xlu0 %475 }
 0x725   :  { %v478_v18 = vadd.f32 %v476_v17, %v468_v16  ;;  %v172_v17 = vadd.f32 %v1461_v11, %v1531_v62 }
 0x727   :  { %1299 = vtanh.f32 %v478_v18 }
 0x734   :  { %v1300_v19 = vpop.eup %1299 }
 0x735   :  { %481 = vrot.lane.b32.xlu1 %v1300_v19, %s1343_s22 }
 0x7a7   :  { %v482_v20 = vpop.permute.xlu1 %481 }
 0x7a8   :  { %v484_v21 = vmul.f32 %v1298_v13, %v482_v20 }
 0x7aa   :  { %486 = vrot.lane.b32.xlu0 %v484_v21, %s1344_s2 }
 0x81c   :  { %v487_v22 = vpop.permute.xlu0 %486 }
 0x81d   :  { %1216 = vmatmul.mubr.msk.f32.vlgmr.msra.gmra.mxu1 %vm182_vm2, %v487_v22 }
 0x81e   :  { %1230 = vmatpush3.msra.mxu1 %v1397_v2  ;;  %1237 = vmatprep.mubr.msk.f32.mxu1 %vm1342_vm0, %v1341_v0 }
 0x81f   :  { %1231 = vmatprep.subr.mxu1 %v1341_v0 }
 0x820   :  { %1232 = vmatpush3.msra.mxu1 %v1408_v4 }
 0x821   :  { %1233 = vmatprep.subr.mxu1 %v1341_v0 }
 0x822   :  { %1234 = vmatpush3.msra.mxu1 %v1421_v7 }
 0x823   :  { %1235 = vmatprep.subr.mxu1 %v1341_v0 }
 0x824   :  { %1236 = vmatpush3.msra.mxu1 %v1429_v8 }
 0x825   :  { %1251 = vmatprep.subr.mxu1 %v1341_v0 }
 0x8dd   :  { %v556_v24 = vpop.f32.mrf.mxu1 }
 0x8de   :  { %v560_v25 = vadd.f32 %v556_v24, %v157_v23 }
 0x8df   :  { %v1217_v26 = vpop.f32.mrf.mxu1 }
 0x8e0   :  { %1301 = vtanh.f32 %v560_v25  ;;  %v1092_v28 = vmul.f32 -1.442695, %v560_v25 }
 0x8e2   :  { %1303 = vpow2.f32 %v1092_v28 }
 0x8ed   :  { %v1302_v27 = vpop.eup %1301 }
 0x8ee   :  { %570 = vrot.lane.b32.xlu1 %v1302_v27, %s1343_s22 }
 0x8ef   :  { %v1304_v29 = vpop.eup %1303 }
 0x8f0   :  { %v564_v30 = vadd.f32 1.0, %v1304_v29 }
 0x8f2   :  { %1305 = vrcp.f32 %v564_v30 }
 0x8ff   :  { %v1306_v31 = vpop.eup %1305 }
 0x900   :  { %v568_v34 = vmul.f32 %v1306_v31, %v478_v18 }
 0x960   :  { %v571_v32 = vpop.permute.xlu1 %570 }
 0x961   :  { %v573_v33 = vmul.f32 %v1306_v31, %v571_v32 }
 0x963   :  { %575 = vrot.lane.b32.xlu0 %v573_v33, %s1343_s22 }
 0x9d5   :  { %v576_v35 = vpop.permute.xlu0 %575 }
 0x9d6   :  { %v578_v36 = vadd.f32 %v576_v35, %v568_v34  ;;  %v177_v34 = vadd.f32 %v1529_v61, %v1461_v11  ;;  %v988_v61 = vld [vmem:[%s1631_s6 + $0x18] sm:$0xff] }
 0x9d8   :  { %1307 = vtanh.f32 %v578_v36 }
 0x9e5   :  { %v1308_v37 = vpop.eup %1307 }
 0x9e6   :  { %581 = vrot.lane.b32.xlu1 %v1308_v37, %s1343_s22 }
 0xa58   :  { %v582_v38 = vpop.permute.xlu1 %581 }
 0xa59   :  { %v584_v39 = vmul.f32 %v1306_v31, %v582_v38 }
 0xa5b   :  { %586 = vrot.lane.b32.xlu0 %v584_v39, %s1344_s2 }
 0xacd   :  { %v587_v40 = vpop.permute.xlu0 %586 }
 0xace   :  { %1227 = vmatmul.mubr.msk.f32.vlgmr.msra.gmra.mxu0 %vm182_vm2, %v587_v40 }
 0xacf   :  { %1241 = vmatpush3.msra.mxu0 %v1397_v2  ;;  %1248 = vmatprep.mubr.msk.f32.mxu0 %vm1342_vm0, %v1341_v0 }
 0xad0   :  { %1242 = vmatprep.subr.mxu0 %v1341_v0 }
 0xad1   :  { %1243 = vmatpush3.msra.mxu0 %v1408_v4 }
 0xad2   :  { %1244 = vmatprep.subr.mxu0 %v1341_v0 }
 0xad3   :  { %1245 = vmatpush3.msra.mxu0 %v1421_v7 }
 0xad4   :  { %1246 = vmatprep.subr.mxu0 %v1341_v0 }
 0xad5   :  { %1247 = vmatpush3.msra.mxu0 %v1429_v8 }
 0xad6   :  { %1262 = vmatprep.subr.mxu0 %v1341_v0 }
 0xb8e   :  { %v656_v42 = vpop.f32.mrf.mxu0 }
 0xb8f   :  { %v660_v43 = vadd.f32 %v656_v42, %v162_v41 }
 0xb90   :  { %v1228_v44 = vpop.f32.mrf.mxu0 }
 0xb91   :  { %1309 = vtanh.f32 %v660_v43  ;;  %v1094_v46 = vmul.f32 -1.442695, %v660_v43 }
 0xb93   :  { %1311 = vpow2.f32 %v1094_v46 }
 0xb9e   :  { %v1310_v45 = vpop.eup %1309 }
 0xb9f   :  { %670 = vrot.lane.b32.xlu1 %v1310_v45, %s1343_s22 }
 0xba0   :  { %v1312_v47 = vpop.eup %1311 }
 0xba1   :  { %v664_v48 = vadd.f32 1.0, %v1312_v47  ;;  %v987_v47 = vld [vmem:[%s1631_s6 + $0x10] sm:$0xff] }
 0xba3   :  { %1313 = vrcp.f32 %v664_v48  ;;  %v986_v48 = vld [vmem:[%s1631_s6 + $0x8] sm:$0xff] }
 0xbb0   :  { %v1314_v49 = vpop.eup %1313 }
 0xbb1   :  { %v668_v52 = vmul.f32 %v1314_v49, %v578_v36 }
 0xc11   :  { %v671_v50 = vpop.permute.xlu1 %670 }
 0xc12   :  { %v673_v51 = vmul.f32 %v1314_v49, %v671_v50 }
 0xc14   :  { %675 = vrot.lane.b32.xlu0 %v673_v51, %s1343_s22 }
 0xc86   :  { %v676_v53 = vpop.permute.xlu0 %675 }
 0xc87   :  { %v678_v54 = vadd.f32 %v676_v53, %v668_v52 }
 0xc89   :  { %1315 = vtanh.f32 %v678_v54 }
 0xc96   :  { %v1316_v55 = vpop.eup %1315 }
 0xc97   :  { %681 = vrot.lane.b32.xlu1 %v1316_v55, %s1343_s22 }
 0xd09   :  { %v682_v56 = vpop.permute.xlu1 %681 }
 0xd0a   :  { %v684_v57 = vmul.f32 %v1314_v49, %v682_v56  ;;  %v985_v49 = vld [vmem:[%s1631_s6] sm:$0xff] }
 0xd0c   :  { %686 = vrot.lane.b32.xlu0 %v684_v57, %s1344_s2 }
 0xd7e   :  { %v687_v58 = vpop.permute.xlu0 %686 }
 0xd7f   :  { %1238 = vmatmul.mubr.msk.f32.vlgmr.msra.gmra.mxu1 %vm182_vm2, %v687_v58 }
 0xd80   :  { %1252 = vmatpush3.msra.mxu1 %v1397_v2  ;;  %1259 = vmatprep.mubr.msk.f32.mxu1 %vm1342_vm0, %v1341_v0 }
 0xd81   :  { %1253 = vmatprep.subr.mxu1 %v1341_v0 }
 0xd82   :  { %1254 = vmatpush3.msra.mxu1 %v1408_v4 }
 0xd83   :  { %1255 = vmatprep.subr.mxu1 %v1341_v0 }
 0xd84   :  { %1256 = vmatpush3.msra.mxu1 %v1421_v7 }
 0xd85   :  { %1257 = vmatprep.subr.mxu1 %v1341_v0 }
 0xd86   :  { %1258 = vmatpush3.msra.mxu1 %v1429_v8 }
 0xe3f   :  { %v756_v63 = vpop.f32.mrf.mxu1 }
 0xe40   :  { %v760_v2 = vadd.f32 %v756_v63, %v167_v60 }
 0xe41   :  { %v1239_v1 = vpop.f32.mrf.mxu1 }
 0xe42   :  { %1317 = vtanh.f32 %v760_v2  ;;  %v1096_v5 = vmul.f32 -1.442695, %v760_v2 }
 0xe44   :  { %1319 = vpow2.f32 %v1096_v5 }
 0xe4f   :  { %v1318_v3 = vpop.eup %1317 }
 0xe50   :  { %770 = vrot.lane.b32.xlu1 %v1318_v3, %s1343_s22 }
 0xe51   :  { %v1320_v4 = vpop.eup %1319 }
 0xe52   :  { %v764_v6 = vadd.f32 1.0, %v1320_v4 }
 0xe54   :  { %1321 = vrcp.f32 %v764_v6 }
 0xe61   :  { %v1322_v7 = vpop.eup %1321 }
 0xe62   :  { %v768_v8 = vmul.f32 %v1322_v7, %v678_v54  ;;  %v1101_v54 = vld [vmem:[%s1632_s7] ss:$0 sm:$0xff] }
 0xec2   :  { %v771_v9 = vpop.permute.xlu1 %770 }
 0xec3   :  { %v773_v10 = vmul.f32 %v1322_v7, %v771_v9 }
 0xec5   :  { %775 = vrot.lane.b32.xlu0 %v773_v10, %s1343_s22 }
 0xf37   :  { %v776_v12 = vpop.permute.xlu0 %775 }
 0xf38   :  { %v778_v59 = vadd.f32 %v776_v12, %v768_v8 }
 0xf3a   :  { %1323 = vtanh.f32 %v778_v59 }
 0xf47   :  { %v1324_v13 = vpop.eup %1323 }
 0xf48   :  { %781 = vrot.lane.b32.xlu1 %v1324_v13, %s1343_s22 }
 0xfba   :  { %v782_v14 = vpop.permute.xlu1 %781 }
 0xfbb   :  { %v784_v15 = vmul.f32 %v1322_v7, %v782_v14 }
 0xfbd   :  { %786 = vrot.lane.b32.xlu0 %v784_v15, %s1344_s2 }
0x102f   :  { %v787_v16 = vpop.permute.xlu0 %786 }
0x1030   :  { %1249 = vmatmul.mubr.msk.f32.vlgmr.msra.gmra.mxu0 %vm182_vm2, %v787_v16 }
0x1031   :  { %1270 = vmatprep.mubr.msk.f32.mxu0 %vm1342_vm0, %v1341_v0  ;;  %1263 = vmatpush3.msra.mxu0 %v988_v61 }
0x1032   :  { %1264 = vmatprep.subr.mxu0 %v1341_v0 }
0x1033   :  { %1265 = vmatpush3.msra.mxu0 %v987_v47 }
0x1034   :  { %1266 = vmatprep.subr.mxu0 %v1341_v0 }
0x1035   :  { %1267 = vmatpush3.msra.mxu0 %v986_v48 }
0x1036   :  { %1268 = vmatprep.subr.mxu0 %v1341_v0 }
0x1037   :  { %1269 = vmatpush3.msra.mxu0 %v985_v49 }
0x10f0   :  { %v856_v18 = vpop.f32.mrf.mxu0 }
0x10f1   :  { %v860_v19 = vadd.f32 %v856_v18, %v172_v17 }
0x10f2   :  { %v1250_v20 = vpop.f32.mrf.mxu0 }
0x10f3   :  { %1325 = vtanh.f32 %v860_v19  ;;  %v1098_v22 = vmul.f32 -1.442695, %v860_v19 }
0x10f5   :  { %1327 = vpow2.f32 %v1098_v22 }
0x1100   :  { %v1326_v21 = vpop.eup %1325 }
0x1101   :  { %870 = vrot.lane.b32.xlu1 %v1326_v21, %s1343_s22 }
0x1102   :  { %v1328_v23 = vpop.eup %1327 }
0x1103   :  { %v864_v24 = vadd.f32 1.0, %v1328_v23 }
0x1105   :  { %1329 = vrcp.f32 %v864_v24 }
0x1112   :  { %v1330_v25 = vpop.eup %1329 }
0x1113   :  { %v868_v28 = vmul.f32 %v1330_v25, %v778_v59 }
0x1173   :  { %v871_v26 = vpop.permute.xlu1 %870 }
0x1174   :  { %v873_v27 = vmul.f32 %v1330_v25, %v871_v26 }
0x1176   :  { %875 = vrot.lane.b32.xlu0 %v873_v27, %s1343_s22 }
0x11e8   :  { %v876_v29 = vpop.permute.xlu0 %875 }
0x11e9   :  { %v878_v62 = vadd.f32 %v876_v29, %v868_v28 }
0x11eb   :  { %1331 = vtanh.f32 %v878_v62 }
0x11f8   :  { %v1332_v30 = vpop.eup %1331 }
0x11f9   :  { %881 = vrot.lane.b32.xlu1 %v1332_v30, %s1343_s22 }
0x126b   :  { %v882_v31 = vpop.permute.xlu1 %881 }
0x126c   :  { %v884_v32 = vmul.f32 %v1330_v25, %v882_v31 }
0x126e   :  { %886 = vrot.lane.b32.xlu0 %v884_v32, %s1344_s2 }
0x12e0   :  { %v887_v33 = vpop.permute.xlu0 %886 }
0x12e1   :  { %1260 = vmatmul.mubr.msk.f32.vlgmr.msra.gmra.mxu1 %vm182_vm2, %v887_v33 }
0x13a1   :  { %v956_v35 = vpop.f32.mrf.mxu1 }
0x13a2   :  { %v960_v36 = vadd.f32 %v956_v35, %v177_v34 }
0x13a3   :  { %v1261_v37 = vpop.f32.mrf.mxu1 }
0x13a4   :  { %1333 = vtanh.f32 %v960_v36  ;;  %v1100_v39 = vmul.f32 -1.442695, %v960_v36 }
0x13a6   :  { %1335 = vpow2.f32 %v1100_v39 }
0x13b1   :  { %v1334_v38 = vpop.eup %1333 }
0x13b2   :  { %970 = vrot.lane.b32.xlu1 %v1334_v38, %s1343_s22 }
0x13b3   :  { %v1336_v40 = vpop.eup %1335 }
0x13b4   :  { %v964_v41 = vadd.f32 1.0, %v1336_v40 }
0x13b6   :  { %1337 = vrcp.f32 %v964_v41 }
0x13c3   :  { %v1338_v42 = vpop.eup %1337 }
0x13c4   :  { %v968_v45 = vmul.f32 %v1338_v42, %v878_v62 }
0x1424   :  { %v971_v43 = vpop.permute.xlu1 %970 }
0x1425   :  { %v973_v44 = vmul.f32 %v1338_v42, %v971_v43 }
0x1427   :  { %975 = vrot.lane.b32.xlu0 %v973_v44, %s1343_s22 }
0x1499   :  { %v976_v46 = vpop.permute.xlu0 %975 }
0x149a   :  { %v978_v11 = vadd.f32 %v976_v46, %v968_v45 }
0x149c   :  { %1339 = vtanh.f32 %v978_v11 }
0x14a9   :  { %v1340_v50 = vpop.eup %1339 }
0x14aa   :  { %981 = vrot.lane.b32.xlu1 %v1340_v50, %s1343_s22 }
0x151c   :  { %v982_v51 = vpop.permute.xlu1 %981 }
0x151d   :  { %v984_v52 = vmul.f32 %v1338_v42, %v982_v51 }
0x151f   :  { %997 = vrot.lane.b32.xlu0 %v984_v52, %s1344_s2 }
0x1591   :  { %v998_v53 = vpop.permute.xlu0 %997 }
0x1592   :  { %1271 = vmatmul.mubr.msk.f32.vlgmr.msra.gmra.mxu0 %vm182_vm2, %v998_v53 }
0x1652   :  { %v1067_v55 = vpop.f32.mrf.mxu0 }
0x1653   :  { %v1068_v56 = vadd.f32 %v1101_v54, %v1067_v55 }
0x1654   :  { %v1272_v57 = vpop.f32.mrf.mxu0 }
0x1655   :  { %1071 = vst [vmem:[%s1633_s8] sm:$0xff] %v1068_v56 }

</bundles_post_ra>
